<compile_context>
chip_gen: v7x
topology: tpu7x:2x2x1
jax: 0.10.0
libtpu: 0.0.40
codegen_flags: <defaults>
</compile_context>

<pallas_src>
import jax
import jax.numpy as jnp
from jax.experimental import pallas as pl
from jax.experimental.pallas import tpu as pltpu

_LEAKY_SLOPE = 0.01  # nn.LeakyReLU() default


def _leaky_relu(y):
    return jnp.where(y > 0, y, _LEAKY_SLOPE * y)


def _round_up(x, m):
    return ((x + m - 1) // m) * m


# ----------------------------- kernels --------------------------------------

def _fused_kernel(pe_ref, dn_ref, wT_ref, b_ref, out_ref):
    # pe_ref : (tn, out_c)   point_edge[:, :out_c] row tile
    # dn_ref : (tn, D)       distribution_node row tile
    # wT_ref : (in_c, out_c) full weight^T (resident across grid)
    # b_ref  : (1, out_c)    f32 bias (resident)
    # out_ref: (tn, out_c)
    x = jnp.concatenate([pe_ref[...], dn_ref[...]], axis=-1)          # (tn, in_c)
    y = jnp.dot(x, wT_ref[...], preferred_element_type=jnp.float32)   # f32 acc
    y = y + b_ref[...]
    out_ref[...] = _leaky_relu(y).astype(out_ref.dtype)


def _split_kernel(pe_ref, dn_ref, w1T_ref, w2T_ref, b_ref, out_ref):
    # Two-dot path (used when out_c is not lane-aligned, so an in-kernel concat
    # would need a cross-lane relayout).
    y = jnp.dot(pe_ref[...], w1T_ref[...], preferred_element_type=jnp.float32)
    y = y + jnp.dot(dn_ref[...], w2T_ref[...], preferred_element_type=jnp.float32)
    y = y + b_ref[...]
    out_ref[...] = _leaky_relu(y).astype(out_ref.dtype)


# ----------------------------- wrapper ---------------------------------------

def _p2dagg_xla(point_edge, distribution_node, weight, bias, out_c):
    B, N, _ = point_edge.shape
    x = jnp.concatenate([point_edge[:, :, :out_c], distribution_node], axis=2)
    y = x.reshape(B * N, -1) @ weight.T + bias
    return _leaky_relu(y).reshape(B, N, out_c)


def p2d_agg(point_edge, distribution_node, weight, bias, out_c, *,
            tn=1024, out_dtype=None):
    """point_edge: (B, N, E) with E >= out_c; distribution_node: (B, N, D);
    weight: (out_c, in_c) with in_c = out_c + D; bias: (out_c,)."""
    B, N, E = point_edge.shape
    B2, N2, D = distribution_node.shape
    assert (B, N) == (B2, N2)
    in_c = out_c + D
    assert E >= out_c
    assert weight.shape == (out_c, in_c)
    assert bias.shape == (out_c,)

    stream_dtype = jnp.promote_types(point_edge.dtype, distribution_node.dtype)
    if out_dtype is None:
        out_dtype = stream_dtype
    M = B * N

    # Tiny-feature dispatch: MXU output rows / contraction depth are <=16/256
    # here; plain XLA is at least as good for this memory/overhead-bound size.
    if out_c <= 16:
        return _p2dagg_xla(point_edge, distribution_node, weight, bias,
                           out_c).astype(out_dtype)

    # Row-major tiling.  (B, N, C) -> (B*N, C) is a free contiguous reshape.
    dn2 = distribution_node.astype(stream_dtype).reshape(M, D)
    if E == out_c:
        pe2 = point_edge.astype(stream_dtype).reshape(M, E)
    elif out_c % 128 == 0:
        # [:, :, :out_c] implemented by the BlockSpec extent (legal since
        # out_c % 128 == 0): no HBM slice pass at all.
        pe2 = point_edge.astype(stream_dtype).reshape(M, E)
    else:
        # Small strided HBM copy of out_c of the E columns (still far cheaper
        # than the old transpose+pad passes).
        pe2 = point_edge[:, :, :out_c].astype(stream_dtype).reshape(M, out_c)

    # ---- tile-size selection: VMEM-budget aware, >=2 grid steps when M allows
    itemsize = jnp.dtype(stream_dtype).itemsize
    out_itemsize = jnp.dtype(out_dtype).itemsize
    per_row_bytes = (out_c + D) * itemsize + out_c * out_itemsize
    stream_budget = 16 * 1024 * 1024                 # double-buffered streams
    tn_cap = max(8, stream_budget // (2 * per_row_bytes))
    tn = min(tn, tn_cap)
    if M >= 1024:
        # >=2 grid steps (v7x megacore + pipelining) while keeping tiles >=512.
        tn = min(tn, max(512, _round_up(pl.cdiv(M, 2), 8)))
    tn = max(8, min(_round_up(tn, 8), _round_up(M, 8)))
    grid = (pl.cdiv(M, tn),)

    bias_row = bias.reshape(1, out_c).astype(jnp.float32)

    pe_spec = pl.BlockSpec((tn, out_c), lambda i: (i, 0))   # streamed
    dn_spec = pl.BlockSpec((tn, D), lambda i: (i, 0))       # streamed
    common = dict(
        out_shape=jax.ShapeDtypeStruct((M, out_c), out_dtype),
        grid=grid,
        out_specs=pl.BlockSpec((tn, out_c), lambda i: (i, 0)),
        compiler_params=pltpu.CompilerParams(
            dimension_semantics=("parallel",),
            vmem_limit_bytes=32 * 1024 * 1024,
        ),
    )

    fuse = (out_c % 128 == 0)  # lane-aligned concat -> single K=in_c matmul
    if fuse:
        wT = jnp.transpose(weight).astype(stream_dtype)          # (in_c, out_c)
        out2 = pl.pallas_call(
            _fused_kernel,
            in_specs=[pe_spec, dn_spec,
                      pl.BlockSpec((in_c, out_c), lambda i: (0, 0)),   # resident
                      pl.BlockSpec((1, out_c), lambda i: (0, 0))],     # resident
            **common,
        )(pe2, dn2, wT, bias_row)
    else:
        w1T = jnp.transpose(weight[:, :out_c]).astype(stream_dtype)  # (out_c, out_c)
        w2T = jnp.transpose(weight[:, out_c:]).astype(stream_dtype)  # (D, out_c)
        out2 = pl.pallas_call(
            _split_kernel,
            in_specs=[pe_spec, dn_spec,
                      pl.BlockSpec((out_c, out_c), lambda i: (0, 0)),  # resident
                      pl.BlockSpec((D, out_c), lambda i: (0, 0)),      # resident
                      pl.BlockSpec((1, out_c), lambda i: (0, 0))],     # resident
            **common,
        )(pe2, dn2, w1T, w2T, bias_row)

    return out2.reshape(B, N, out_c)


# ----------------------------- reference & test -------------------------------

def p2d_agg_ref(point_edge, distribution_node, weight, bias, out_c):
    """Pure-JAX f32 reference matching the PyTorch module."""
    B, N, _ = point_edge.shape
    x = jnp.concatenate([point_edge[:, :, :out_c].astype(jnp.float32),
                         distribution_node.astype(jnp.float32)], axis=2)
    y = x.reshape(B * N, -1) @ weight.astype(jnp.float32).T + bias.astype(jnp.float32)
    return _leaky_relu(y).reshape(B, N, out_c)


if __name__ == "__main__":
    key = jax.random.PRNGKey(0)

    # Case 1: f32 streams, out_c % 128 != 0 -> two-dot path, tight tolerance.
    B, N, out_c = 2, 64, 64          # point_edge/distribution_node (B, N, N), in_c = 2N
    in_c = 2 * N
    k1, k2, k3, k4, key = jax.random.split(key, 5)
    pe = jax.random.uniform(k1, (B, N, N), jnp.float32) - 0.5
    dn = jax.random.uniform(k2, (B, N, N), jnp.float32) - 0.5
    bound = 1.0 / (in_c ** 0.5)
    w = jax.random.uniform(k3, (out_c, in_c), jnp.float32, minval=-bound, maxval=bound)
    b = jax.random.uniform(k4, (out_c,), jnp.float32, minval=-bound, maxval=bound)
    out = jax.block_until_ready(p2d_agg(pe, dn, w, b, out_c))
    ref = p2d_agg_ref(pe, dn, w, b, out_c)
    assert out.shape == (B, N, out_c) and out.dtype == jnp.float32
    assert jnp.allclose(out, ref, atol=1e-5, rtol=1e-5)

    # Case 2: bf16 streams with f32 MXU accumulation, out_c % 128 == 0 -> fused
    # single-matmul path.  bf16 inputs are built at the producer (no cast pass).
    B, N, out_c = 2, 128, 128
    in_c = 2 * N
    k1, k2, k3, k4, key = jax.random.split(key, 5)
    pe = (jax.random.uniform(k1, (B, N, N), jnp.float32) - 0.5).astype(jnp.bfloat16)
    dn = (jax.random.uniform(k2, (B, N, N), jnp.float32) - 0.5).astype(jnp.bfloat16)
    bound = 1.0 / (in_c ** 0.5)
    w = jax.random.uniform(k3, (out_c, in_c), jnp.float32,
                           minval=-bound, maxval=bound).astype(jnp.bfloat16)
    b = jax.random.uniform(k4, (out_c,), jnp.float32,
                           minval=-bound, maxval=bound).astype(jnp.bfloat16)
    out = jax.block_until_ready(p2d_agg(pe, dn, w, b, out_c))
    ref = p2d_agg_ref(pe, dn, w, b, out_c)
    assert out.shape == (B, N, out_c) and out.dtype == jnp.bfloat16
    assert jnp.allclose(out.astype(jnp.float32), ref, atol=1e-2, rtol=1e-2)

    print("KERNEL_OK")
</pallas_src>

<mosaic_0001>
module attributes {stable_mosaic.version = 11 : i64} {
  func.func @_split_kernel(%arg0: i32, %arg1: memref<128x64xf32, #tpu.memory_space<vmem>>, %arg2: memref<128x64xf32, #tpu.memory_space<vmem>>, %arg3: memref<64x64xf32, #tpu.memory_space<vmem>>, %arg4: memref<64x64xf32, #tpu.memory_space<vmem>>, %arg5: memref<1x64xf32, #tpu.memory_space<vmem>>, %arg6: memref<128x64xf32, #tpu.memory_space<vmem>>) attributes {dimension_semantics = [#tpu.dimension_semantics<parallel>], iteration_bounds = array<i64: 1>, scalar_prefetch = 0 : i64, scratch_operands = 0 : i64, tpu.core_type = #tpu.core_type<tc>, window_params = [{transform_indices = @transform_0, window_bounds = array<i64: 128, 64>}, {transform_indices = @transform_1, window_bounds = array<i64: 128, 64>}, {pipeline_mode = #tpu.pipeline_mode<synchronous>, transform_indices = @transform_2, window_bounds = array<i64: 64, 64>}, {pipeline_mode = #tpu.pipeline_mode<synchronous>, transform_indices = @transform_3, window_bounds = array<i64: 64, 64>}, {pipeline_mode = #tpu.pipeline_mode<synchronous>, transform_indices = @transform_4, window_bounds = array<i64: 1, 64>}, {transform_indices = @transform_5, window_bounds = array<i64: 128, 64>}]} {
    %c0 = arith.constant 0 : index
    %c0_0 = arith.constant 0 : index
    %0 = vector.load %arg1[%c0, %c0_0] : memref<128x64xf32, #tpu.memory_space<vmem>>, vector<128x64xf32>
    %c0_1 = arith.constant 0 : index
    %c0_2 = arith.constant 0 : index
    %1 = vector.load %arg3[%c0_1, %c0_2] : memref<64x64xf32, #tpu.memory_space<vmem>>, vector<64x64xf32>
    %cst = arith.constant dense<0.000000e+00> : vector<128x64xf32>
    %2 = tpu.matmul %0, %1, %cst {dimension_numbers = #tpu.dot_dimension_numbers<[1], [0], [0], [1], [0, 0, 1, 1], [], []>} : vector<128x64xf32>, vector<64x64xf32>, vector<128x64xf32> -> vector<128x64xf32>
    %c0_3 = arith.constant 0 : index
    %c0_4 = arith.constant 0 : index
    %3 = vector.load %arg2[%c0_3, %c0_4] : memref<128x64xf32, #tpu.memory_space<vmem>>, vector<128x64xf32>
    %c0_5 = arith.constant 0 : index
    %c0_6 = arith.constant 0 : index
    %4 = vector.load %arg4[%c0_5, %c0_6] : memref<64x64xf32, #tpu.memory_space<vmem>>, vector<64x64xf32>
    %cst_7 = arith.constant dense<0.000000e+00> : vector<128x64xf32>
    %5 = tpu.matmul %3, %4, %cst_7 {dimension_numbers = #tpu.dot_dimension_numbers<[1], [0], [0], [1], [0, 0, 1, 1], [], []>} : vector<128x64xf32>, vector<64x64xf32>, vector<128x64xf32> -> vector<128x64xf32>
    %6 = arith.addf %2, %5 : vector<128x64xf32>
    %c0_8 = arith.constant 0 : index
    %c0_9 = arith.constant 0 : index
    %7 = vector.load %arg5[%c0_8, %c0_9] : memref<1x64xf32, #tpu.memory_space<vmem>>, vector<1x64xf32>
    %8 = vector.broadcast %7 : vector<1x64xf32> to vector<128x64xf32>
    %9 = arith.addf %6, %8 : vector<128x64xf32>
    %cst_10 = arith.constant 0.000000e+00 : f32
    %10 = vector.broadcast %cst_10 : f32 to vector<128x64xf32>
    %11 = arith.cmpf ogt, %9, %10 : vector<128x64xf32>
    %cst_11 = arith.constant 0.00999999977 : f32
    %12 = vector.broadcast %cst_11 : f32 to vector<128x64xf32>
    %13 = arith.mulf %12, %9 : vector<128x64xf32>
    %14 = arith.select %11, %9, %13 : vector<128x64xi1>, vector<128x64xf32>
    %c0_12 = arith.constant 0 : index
    %c0_13 = arith.constant 0 : index
    %15 = vector.load %arg6[%c0_12, %c0_13] : memref<128x64xf32, #tpu.memory_space<vmem>>, vector<128x64xf32>
    tpu.vector_store %arg6[%c0_12, %c0_13], %14 {strides = array<i32>} : memref<128x64xf32, #tpu.memory_space<vmem>>, vector<128x64xf32>,
    return
  }
  func.func @transform_0(%arg0: i32) -> (i32, i32) {
    %c0_i32 = arith.constant 0 : i32
    %c0_i32_0 = arith.constant 0 : i32
    return %arg0, %c0_i32 : i32, i32
  }
  func.func @transform_1(%arg0: i32) -> (i32, i32) {
    %c0_i32 = arith.constant 0 : i32
    %c0_i32_0 = arith.constant 0 : i32
    return %arg0, %c0_i32 : i32, i32
  }
  func.func @transform_2(%arg0: i32) -> (i32, i32) {
    %c0_i32 = arith.constant 0 : i32
    %c0_i32_0 = arith.constant 0 : i32
    %c0_i32_1 = arith.constant 0 : i32
    return %c0_i32, %c0_i32_0 : i32, i32
  }
  func.func @transform_3(%arg0: i32) -> (i32, i32) {
    %c0_i32 = arith.constant 0 : i32
    %c0_i32_0 = arith.constant 0 : i32
    %c0_i32_1 = arith.constant 0 : i32
    return %c0_i32, %c0_i32_0 : i32, i32
  }
  func.func @transform_4(%arg0: i32) -> (i32, i32) {
    %c0_i32 = arith.constant 0 : i32
    %c0_i32_0 = arith.constant 0 : i32
    %c0_i32_1 = arith.constant 0 : i32
    return %c0_i32, %c0_i32_0 : i32, i32
  }
  func.func @transform_5(%arg0: i32) -> (i32, i32) {
    %c0_i32 = arith.constant 0 : i32
    %c0_i32_0 = arith.constant 0 : i32
    return %arg0, %c0_i32 : i32, i32
  }
}

</mosaic_0001>

<bundles_post_ra>
// kernel: tpu_custom_call.1
= control target key start
LH: loop header
LB: loop body
LE: loop exit
PB: predicated region body
PF: predicated region fallthrough
CT: control target
= control target key end

     0   :  { %vm68_vm0 = vcmask 523264   ;;  %s1046_s3 = inlined_call_operand.vmem [shape: f32[64,64], index: 3, kind: input, shape index: {}]   ;;  %s1047_s2 = inlined_call_operand.vmem [shape: f32[64,64], index: 2, kind: input, shape index: {}]   ;;  %s1048_s1 = inlined_call_operand.vmem [shape: f32[128,64], index: 1, kind: input, shape index: {}]   ;;  %s1049_s0 = inlined_call_operand.vmem [shape: f32[128,64], index: 0, kind: input, shape index: {}]   ;;  %s1050_s4 = inlined_call_operand.vmem [shape: f32[1,64], index: 4, kind: input, shape index: {}]   ;;  %s1051_s5 = inlined_call_operand.vmem [shape: f32[128,64], index: 5, kind: output, shape index: {}]  }
   0x1   :  { %v60_v0 = vld [vmem:[%s1046_s3] sm:$0xff]  ;;  %v61_v1 = vld [vmem:[%s1046_s3 + $0x8] sm:$0xff]  ;;  %v62_v5 = vld [vmem:[%s1046_s3 + $0x10] sm:$0xff] }
   0x2   :  { %v36_v2 = vld [vmem:[%s1047_s2] sm:$0xff]  ;;  %v707_v3 = vpack.c.bf16 %v61_v1, %v60_v0  ;;  %v37_v4 = vld [vmem:[%s1047_s2 + $0x8] sm:$0xff]  ;;  %v63_v6 = vld [vmem:[%s1046_s3 + $0x18] sm:$0xff] }
   0x3   :  { %v723_v7 = vpack.c.bf16 %v37_v4, %v36_v2  ;;  %v711_v8 = vpack.c.bf16 %v63_v6, %v62_v5  ;;  %v38_v9 = vld [vmem:[%s1047_s2 + $0x10] sm:$0xff]  ;;  %v39_v10 = vld [vmem:[%s1047_s2 + $0x18] sm:$0xff]  ;;  %v64_v11 = vld [vmem:[%s1046_s3 + $0x20] sm:$0xff] }
   0x4   :  { %708 = vmatprep.subr.bf16.mxu1 %v707_v3  ;;  %v727_v12 = vpack.c.bf16 %v39_v10, %v38_v9  ;;  %v65_v13 = vld [vmem:[%s1046_s3 + $0x28] sm:$0xff]  ;;  %v40_v14 = vld [vmem:[%s1047_s2 + $0x20] sm:$0xff]  ;;  %v66_v20 = vld [vmem:[%s1046_s3 + $0x30] sm:$0xff] }
   0x5   :  { %v41_v15 = vld [vmem:[%s1047_s2 + $0x28] sm:$0xff]  ;;  %724 = vmatprep.subr.bf16.mxu0 %v723_v7  ;;  %710 = vmatpush3.bf16.msra.mxu1 %v707_v3  ;;  %v715_v16 = vpack.c.bf16 %v65_v13, %v64_v11  ;;  %v44_v17 = vld [vmem:[%s1048_s1] sm:$0xff]  ;;  %v67_v21 = vld [vmem:[%s1046_s3 + $0x38] sm:$0xff] }
   0x6   :  { %726 = vmatpush3.bf16.msra.mxu0 %v723_v7  ;;  %712 = vmatprep.subr.bf16.mxu1 %v711_v8  ;;  %v20_v18 = vld [vmem:[%s1049_s0] sm:$0xff]  ;;  %v731_v19 = vpack.c.bf16 %v41_v15, %v40_v14  ;;  %v42_v22 = vld [vmem:[%s1047_s2 + $0x30] sm:$0xff]  ;;  %v43_v23 = vld [vmem:[%s1047_s2 + $0x38] sm:$0xff]  ;;  %v719_v24 = vpack.c.bf16 %v67_v21, %v66_v20 }
   0x7   :  { %728 = vmatprep.subr.bf16.mxu0 %v727_v12  ;;  %643 = vmatprep.mubr.msk.f32.mxu1 %vm68_vm0, %v44_v17  ;;  %v735_v25 = vpack.c.bf16 %v43_v23, %v42_v22  ;;  %v45_v26 = vld [vmem:[%s1048_s1 + $0x8] sm:$0xff]  ;;  %v46_v28 = vld [vmem:[%s1048_s1 + $0x10] sm:$0xff]  ;;  %v47_v30 = vld [vmem:[%s1048_s1 + $0x18] sm:$0xff] }
   0x8   :  { %683 = vmatprep.mubr.msk.f32.mxu0 %vm68_vm0, %v20_v18  ;;  %v21_v27 = vld [vmem:[%s1049_s0 + $0x8] sm:$0xff]  ;;  %v22_v29 = vld [vmem:[%s1049_s0 + $0x10] sm:$0xff]  ;;  %v23_v31 = vld [vmem:[%s1049_s0 + $0x18] sm:$0xff] }
   0x9   :  { %714 = vmatpush3.bf16.msra.mxu1 %v711_v8  ;;  %v48_v32 = vld [vmem:[%s1048_s1 + $0x20] sm:$0xff]  ;;  %v49_v34 = vld [vmem:[%s1048_s1 + $0x28] sm:$0xff]  ;;  %v50_v36 = vld [vmem:[%s1048_s1 + $0x30] sm:$0xff] }
   0xa   :  { %730 = vmatpush3.bf16.msra.mxu0 %v727_v12  ;;  %716 = vmatprep.subr.bf16.mxu1 %v715_v16  ;;  %v24_v33 = vld [vmem:[%s1049_s0 + $0x20] sm:$0xff]  ;;  %v25_v35 = vld [vmem:[%s1049_s0 + $0x28] sm:$0xff]  ;;  %v26_v37 = vld [vmem:[%s1049_s0 + $0x30] sm:$0xff] }
   0xb   :  { %732 = vmatprep.subr.bf16.mxu0 %v731_v19  ;;  %v51_v38 = vld [vmem:[%s1048_s1 + $0x38] sm:$0xff]  ;;  %v52_v40 = vld [vmem:[%s1048_s1 + $0x40] sm:$0xff]  ;;  %v53_v42 = vld [vmem:[%s1048_s1 + $0x48] sm:$0xff] }
   0xc   :  { %v27_v39 = vld [vmem:[%s1049_s0 + $0x38] sm:$0xff]  ;;  %v28_v41 = vld [vmem:[%s1049_s0 + $0x40] sm:$0xff]  ;;  %v29_v43 = vld [vmem:[%s1049_s0 + $0x48] sm:$0xff] }
   0xd   :  { %718 = vmatpush3.bf16.msra.mxu1 %v715_v16  ;;  %v54_v44 = vld [vmem:[%s1048_s1 + $0x50] sm:$0xff]  ;;  %v55_v46 = vld [vmem:[%s1048_s1 + $0x58] sm:$0xff]  ;;  %v56_v48 = vld [vmem:[%s1048_s1 + $0x60] sm:$0xff] }
   0xe   :  { %734 = vmatpush3.bf16.msra.mxu0 %v731_v19  ;;  %720 = vmatprep.subr.bf16.mxu1 %v719_v24  ;;  %v30_v45 = vld [vmem:[%s1049_s0 + $0x50] sm:$0xff]  ;;  %v31_v47 = vld [vmem:[%s1049_s0 + $0x58] sm:$0xff]  ;;  %v32_v49 = vld [vmem:[%s1049_s0 + $0x60] sm:$0xff] }
   0xf   :  { %736 = vmatprep.subr.bf16.mxu0 %v735_v25  ;;  %v57_v50 = vld [vmem:[%s1048_s1 + $0x68] sm:$0xff]  ;;  %v58_v52 = vld [vmem:[%s1048_s1 + $0x70] sm:$0xff]  ;;  %v59_v54 = vld [vmem:[%s1048_s1 + $0x78] sm:$0xff] }
  0x10   :  { %v33_v51 = vld [vmem:[%s1049_s0 + $0x68] sm:$0xff]  ;;  %v34_v53 = vld [vmem:[%s1049_s0 + $0x70] sm:$0xff]  ;;  %v35_v55 = vld [vmem:[%s1049_s0 + $0x78] sm:$0xff] }
  0x11   :  { %722 = vmatpush3.bf16.msra.mxu1 %v719_v24  ;;  %v964_v58 = vld [vmem:[%s1050_s4] ss:$0 sm:$0xff] }
  0x12   :  { %738 = vmatpush3.bf16.msra.mxu0 %v735_v25 }
  0x14   :  { %644 = vmatmul.mubr.msk.f32.vlgmr.msra.gmra.mrb[0].mxu1 %vm68_vm0, %v45_v26 }
  0x15   :  { %684 = vmatmul.mubr.msk.f32.vlgmr.msra.gmra.mrb[0].mxu0 %vm68_vm0, %v21_v27  ;;  %646 = vmatprep.mubr.msk.f32.mxu1 %vm68_vm0, %v46_v28 }
  0x16   :  { %686 = vmatprep.mubr.msk.f32.mxu0 %vm68_vm0, %v22_v29 }
  0x18   :  { %647 = vmatmul.mubr.msk.f32.gmra.mrb[2].mxu1 %vm68_vm0, %v47_v30 }
  0x19   :  { %687 = vmatmul.mubr.msk.f32.gmra.mrb[2].mxu0 %vm68_vm0, %v23_v31  ;;  %649 = vmatprep.mubr.msk.f32.mxu1 %vm68_vm0, %v48_v32 }
  0x1a   :  { %689 = vmatprep.mubr.msk.f32.mxu0 %vm68_vm0, %v24_v33 }
  0x1c   :  { %650 = vmatmul.mubr.msk.f32.gmra.mrb[4].mxu1 %vm68_vm0, %v49_v34 }
  0x1d   :  { %690 = vmatmul.mubr.msk.f32.gmra.mrb[4].mxu0 %vm68_vm0, %v25_v35  ;;  %652 = vmatprep.mubr.msk.f32.mxu1 %vm68_vm0, %v50_v36 }
  0x1e   :  { %692 = vmatprep.mubr.msk.f32.mxu0 %vm68_vm0, %v26_v37 }
  0x20   :  { %653 = vmatmul.mubr.msk.f32.gmra.mrb[6].mxu1 %vm68_vm0, %v51_v38 }
  0x21   :  { %693 = vmatmul.mubr.msk.f32.gmra.mrb[6].mxu0 %vm68_vm0, %v27_v39  ;;  %655 = vmatprep.mubr.msk.f32.mxu1 %vm68_vm0, %v52_v40 }
  0x22   :  { %695 = vmatprep.mubr.msk.f32.mxu0 %vm68_vm0, %v28_v41 }
  0x24   :  { %656 = vmatmul.mubr.msk.f32.gmra.mrb[8].mxu1 %vm68_vm0, %v53_v42 }
  0x25   :  { %696 = vmatmul.mubr.msk.f32.gmra.mrb[8].mxu0 %vm68_vm0, %v29_v43  ;;  %658 = vmatprep.mubr.msk.f32.mxu1 %vm68_vm0, %v54_v44 }
  0x26   :  { %698 = vmatprep.mubr.msk.f32.mxu0 %vm68_vm0, %v30_v45 }
  0x28   :  { %659 = vmatmul.mubr.msk.f32.gmra.mrb[10].mxu1 %vm68_vm0, %v55_v46 }
  0x29   :  { %699 = vmatmul.mubr.msk.f32.gmra.mrb[10].mxu0 %vm68_vm0, %v31_v47  ;;  %661 = vmatprep.mubr.msk.f32.mxu1 %vm68_vm0, %v56_v48 }
  0x2a   :  { %701 = vmatprep.mubr.msk.f32.mxu0 %vm68_vm0, %v32_v49 }
  0x2c   :  { %662 = vmatmul.mubr.msk.f32.gmra.mrb[12].mxu1 %vm68_vm0, %v57_v50 }
  0x2d   :  { %702 = vmatmul.mubr.msk.f32.gmra.mrb[12].mxu0 %vm68_vm0, %v33_v51  ;;  %664 = vmatprep.mubr.msk.f32.mxu1 %vm68_vm0, %v58_v52 }
  0x2e   :  { %704 = vmatprep.mubr.msk.f32.mxu0 %vm68_vm0, %v34_v53 }
  0x30   :  { %665 = vmatmul.mubr.msk.f32.gmra.mrb[14].mxu1 %vm68_vm0, %v59_v54 }
  0x31   :  { %705 = vmatmul.mubr.msk.f32.gmra.mrb[14].mxu0 %vm68_vm0, %v35_v55 }
  0xe7   :  { %v645_v56 = vpop.f32.mrb[0].mxu1 }
  0xe8   :  { %v685_v57 = vpop.f32.mrb[0].mxu0  ;;  %v183_v59 = vpop.f32.mrb[1].mxu1 }
  0xe9   :  { %v382_v60 = vadd.f32 %v685_v57, %v645_v56  ;;  %v376_v61 = vpop.f32.mrb[1].mxu0 }
  0xea   :  { %v377_v62 = vadd.f32 %v376_v61, %v183_v59 }
  0xeb   :  { %v463_v63 = vadd.f32 %v964_v58, %v382_v60  ;;  %v648_v0 = vpop.f32.mrb[2].mxu1 }
  0xec   :  { %v462_v1 = vadd.f32 %v964_v58, %v377_v62  ;;  %v688_v2 = vpop.f32.mrb[2].mxu0  ;;  %v193_v3 = vpop.f32.mrb[3].mxu1 }
  0xed   :  { %vm479_vm1 = vcmp.gt.f32.partialorder %v463_v63, 0.0  ;;  %v495_v4 = vmul.f32 0.01, %v463_v63  ;;  %v392_v5 = vadd.f32 %v688_v2, %v648_v0  ;;  %v386_v6 = vpop.f32.mrb[3].mxu0 }
  0xee   :  { %vm478_vm2 = vcmp.gt.f32.partialorder %v462_v1, 0.0  ;;  %v494_v7 = vmul.f32 0.01, %v462_v1  ;;  %v387_v8 = vadd.f32 %v386_v6, %v193_v3 }
  0xef   :  { %v511_v9 = vsel %vm479_vm1, %v463_v63, %v495_v4  ;;  %v465_v10 = vadd.f32 %v964_v58, %v392_v5  ;;  %v651_v11 = vpop.f32.mrb[4].mxu1 }
  0xf0   :  { %527 = vst.msk [vmem:[%s1051_s5 + $0x8] sm:$0xff] %vm68_vm0, %v511_v9  ;;  %v510_v12 = vsel %vm478_vm2, %v462_v1, %v494_v7  ;;  %v464_v13 = vadd.f32 %v964_v58, %v387_v8  ;;  %v691_v14 = vpop.f32.mrb[4].mxu0  ;;  %v203_v15 = vpop.f32.mrb[5].mxu1 }
  0xf1   :  { %526 = vst.msk [vmem:[%s1051_s5] sm:$0xff] %vm68_vm0, %v510_v12  ;;  %vm481_vm3 = vcmp.gt.f32.partialorder %v465_v10, 0.0  ;;  %v497_v16 = vmul.f32 0.01, %v465_v10  ;;  %v402_v17 = vadd.f32 %v691_v14, %v651_v11  ;;  %v396_v18 = vpop.f32.mrb[5].mxu0 }
  0xf2   :  { %vm480_vm4 = vcmp.gt.f32.partialorder %v464_v13, 0.0  ;;  %v496_v19 = vmul.f32 0.01, %v464_v13  ;;  %v397_v20 = vadd.f32 %v396_v18, %v203_v15 }
  0xf3   :  { %v513_v21 = vsel %vm481_vm3, %v465_v10, %v497_v16  ;;  %v467_v22 = vadd.f32 %v964_v58, %v402_v17  ;;  %v654_v23 = vpop.f32.mrb[6].mxu1 }
  0xf4   :  { %529 = vst.msk [vmem:[%s1051_s5 + $0x18] sm:$0xff] %vm68_vm0, %v513_v21  ;;  %v512_v24 = vsel %vm480_vm4, %v464_v13, %v496_v19  ;;  %v466_v25 = vadd.f32 %v964_v58, %v397_v20  ;;  %v694_v26 = vpop.f32.mrb[6].mxu0  ;;  %v213_v27 = vpop.f32.mrb[7].mxu1 }
  0xf5   :  { %528 = vst.msk [vmem:[%s1051_s5 + $0x10] sm:$0xff] %vm68_vm0, %v512_v24  ;;  %vm483_vm5 = vcmp.gt.f32.partialorder %v467_v22, 0.0  ;;  %v499_v28 = vmul.f32 0.01, %v467_v22  ;;  %v412_v29 = vadd.f32 %v694_v26, %v654_v23  ;;  %v406_v30 = vpop.f32.mrb[7].mxu0 }
  0xf6   :  { %vm482_vm6 = vcmp.gt.f32.partialorder %v466_v25, 0.0  ;;  %v498_v31 = vmul.f32 0.01, %v466_v25  ;;  %v407_v32 = vadd.f32 %v406_v30, %v213_v27 }
  0xf7   :  { %v515_v33 = vsel %vm483_vm5, %v467_v22, %v499_v28  ;;  %v469_v34 = vadd.f32 %v964_v58, %v412_v29  ;;  %v657_v35 = vpop.f32.mrb[8].mxu1 }
  0xf8   :  { %531 = vst.msk [vmem:[%s1051_s5 + $0x28] sm:$0xff] %vm68_vm0, %v515_v33  ;;  %v514_v36 = vsel %vm482_vm6, %v466_v25, %v498_v31  ;;  %v468_v37 = vadd.f32 %v964_v58, %v407_v32  ;;  %v697_v38 = vpop.f32.mrb[8].mxu0  ;;  %v223_v39 = vpop.f32.mrb[9].mxu1 }
  0xf9   :  { %530 = vst.msk [vmem:[%s1051_s5 + $0x20] sm:$0xff] %vm68_vm0, %v514_v36  ;;  %vm485_vm7 = vcmp.gt.f32.partialorder %v469_v34, 0.0  ;;  %v501_v40 = vmul.f32 0.01, %v469_v34  ;;  %v422_v41 = vadd.f32 %v697_v38, %v657_v35  ;;  %v416_v42 = vpop.f32.mrb[9].mxu0 }
  0xfa   :  { %vm484_vm8 = vcmp.gt.f32.partialorder %v468_v37, 0.0  ;;  %v500_v43 = vmul.f32 0.01, %v468_v37  ;;  %v417_v44 = vadd.f32 %v416_v42, %v223_v39 }
  0xfb   :  { %v517_v45 = vsel %vm485_vm7, %v469_v34, %v501_v40  ;;  %v471_v46 = vadd.f32 %v964_v58, %v422_v41  ;;  %v660_v47 = vpop.f32.mrb[10].mxu1 }
  0xfc   :  { %533 = vst.msk [vmem:[%s1051_s5 + $0x38] sm:$0xff] %vm68_vm0, %v517_v45  ;;  %v516_v48 = vsel %vm484_vm8, %v468_v37, %v500_v43  ;;  %v470_v49 = vadd.f32 %v964_v58, %v417_v44  ;;  %v700_v50 = vpop.f32.mrb[10].mxu0  ;;  %v233_v51 = vpop.f32.mrb[11].mxu1 }
  0xfd   :  { %532 = vst.msk [vmem:[%s1051_s5 + $0x30] sm:$0xff] %vm68_vm0, %v516_v48  ;;  %vm487_vm9 = vcmp.gt.f32.partialorder %v471_v46, 0.0  ;;  %v503_v52 = vmul.f32 0.01, %v471_v46  ;;  %v432_v53 = vadd.f32 %v700_v50, %v660_v47  ;;  %v426_v54 = vpop.f32.mrb[11].mxu0 }
  0xfe   :  { %vm486_vm10 = vcmp.gt.f32.partialorder %v470_v49, 0.0  ;;  %v502_v55 = vmul.f32 0.01, %v470_v49  ;;  %v427_v56 = vadd.f32 %v426_v54, %v233_v51 }
  0xff   :  { %v519_v57 = vsel %vm487_vm9, %v471_v46, %v503_v52  ;;  %v473_v59 = vadd.f32 %v964_v58, %v432_v53  ;;  %v663_v60 = vpop.f32.mrb[12].mxu1 }
 0x100   :  { %535 = vst.msk [vmem:[%s1051_s5 + $0x48] sm:$0xff] %vm68_vm0, %v519_v57  ;;  %v518_v61 = vsel %vm486_vm10, %v470_v49, %v502_v55  ;;  %v472_v62 = vadd.f32 %v964_v58, %v427_v56  ;;  %v703_v63 = vpop.f32.mrb[12].mxu0  ;;  %v243_v0 = vpop.f32.mrb[13].mxu1 }
 0x101   :  { %534 = vst.msk [vmem:[%s1051_s5 + $0x40] sm:$0xff] %vm68_vm0, %v518_v61  ;;  %vm489_vm11 = vcmp.gt.f32.partialorder %v473_v59, 0.0  ;;  %v505_v1 = vmul.f32 0.01, %v473_v59  ;;  %v442_v2 = vadd.f32 %v703_v63, %v663_v60  ;;  %v436_v3 = vpop.f32.mrb[13].mxu0 }
 0x102   :  { %vm488_vm12 = vcmp.gt.f32.partialorder %v472_v62, 0.0  ;;  %v504_v4 = vmul.f32 0.01, %v472_v62  ;;  %v437_v5 = vadd.f32 %v436_v3, %v243_v0 }
 0x103   :  { %v521_v6 = vsel %vm489_vm11, %v473_v59, %v505_v1  ;;  %v475_v7 = vadd.f32 %v964_v58, %v442_v2  ;;  %v666_v8 = vpop.f32.mrb[14].mxu1 }
 0x104   :  { %537 = vst.msk [vmem:[%s1051_s5 + $0x58] sm:$0xff] %vm68_vm0, %v521_v6  ;;  %v520_v9 = vsel %vm488_vm12, %v472_v62, %v504_v4  ;;  %v474_v10 = vadd.f32 %v964_v58, %v437_v5  ;;  %v706_v11 = vpop.f32.mrb[14].mxu0  ;;  %v253_v12 = vpop.f32.mrb[15].mxu1 }
 0x105   :  { %536 = vst.msk [vmem:[%s1051_s5 + $0x50] sm:$0xff] %vm68_vm0, %v520_v9  ;;  %vm491_vm13 = vcmp.gt.f32.partialorder %v475_v7, 0.0  ;;  %v507_v13 = vmul.f32 0.01, %v475_v7  ;;  %v452_v14 = vadd.f32 %v706_v11, %v666_v8  ;;  %v446_v15 = vpop.f32.mrb[15].mxu0 }
 0x106   :  { %vm490_vm14 = vcmp.gt.f32.partialorder %v474_v10, 0.0  ;;  %v506_v16 = vmul.f32 0.01, %v474_v10  ;;  %v447_v17 = vadd.f32 %v446_v15, %v253_v12 }
 0x107   :  { %v523_v18 = vsel %vm491_vm13, %v475_v7, %v507_v13  ;;  %v477_v19 = vadd.f32 %v964_v58, %v452_v14 }
 0x108   :  { %539 = vst.msk [vmem:[%s1051_s5 + $0x68] sm:$0xff] %vm68_vm0, %v523_v18  ;;  %v522_v20 = vsel %vm490_vm14, %v474_v10, %v506_v16  ;;  %v476_v21 = vadd.f32 %v964_v58, %v447_v17 }
 0x109   :  { %538 = vst.msk [vmem:[%s1051_s5 + $0x60] sm:$0xff] %vm68_vm0, %v522_v20  ;;  %vm493_vm15 = vcmp.gt.f32.partialorder %v477_v19, 0.0  ;;  %v509_v22 = vmul.f32 0.01, %v477_v19 }
 0x10a   :  { %vm492_vm1 = vcmp.gt.f32.partialorder %v476_v21, 0.0  ;;  %v508_v23 = vmul.f32 0.01, %v476_v21 }
 0x10b   :  { %v525_v24 = vsel %vm493_vm15, %v477_v19, %v509_v22 }
 0x10c   :  { %541 = vst.msk [vmem:[%s1051_s5 + $0x78] sm:$0xff] %vm68_vm0, %v525_v24  ;;  %v524_v25 = vsel %vm492_vm1, %v476_v21, %v508_v23 }
 0x10d   :  { %540 = vst.msk [vmem:[%s1051_s5 + $0x70] sm:$0xff] %vm68_vm0, %v524_v25 }

</bundles_post_ra>
